<compile_context>
chip_gen: v5e
topology: v5e:2x2
jax: 0.10.0
libtpu: 0.0.40
codegen_flags: <defaults>
</compile_context>

<pallas_src>
import functools

import jax
import jax.numpy as jnp
from jax.experimental import pallas as pl
from jax.experimental.pallas import tpu as pltpu


# ----------------------------------------------------------------------------
# Pallas kernels: tiled matmul with fused (per-column scale, bias, ReLU) epilogue
# ----------------------------------------------------------------------------
def _mm_single_k_kernel(x_ref, w_ref, s_ref, b_ref, o_ref, *, relu):
    """Whole-K-in-one-tile variant: no accumulator scratch, no k phases."""
    acc = jnp.dot(x_ref[...], w_ref[...].astype(jnp.bfloat16),
                  preferred_element_type=jnp.float32)
    y = acc * s_ref[...] + b_ref[...]
    if relu:
        y = jnp.maximum(y, 0.0)
    o_ref[...] = y.astype(o_ref.dtype)


def _mm_multi_k_kernel(x_ref, w_ref, s_ref, b_ref, o_ref, acc_ref, *, relu):
    k = pl.program_id(2)

    @pl.when(k == 0)
    def _():
        acc_ref[...] = jnp.zeros_like(acc_ref)

    acc_ref[...] += jnp.dot(x_ref[...], w_ref[...].astype(jnp.bfloat16),
                            preferred_element_type=jnp.float32)

    @pl.when(k == pl.num_programs(2) - 1)
    def _():
        y = acc_ref[...] * s_ref[...] + b_ref[...]
        if relu:
            y = jnp.maximum(y, 0.0)
        o_ref[...] = y.astype(o_ref.dtype)


# ----------------------------------------------------------------------------
# Tiling helpers / generation-aware budgets
# ----------------------------------------------------------------------------
def _round_up(x, m):
    return ((x + m - 1) // m) * m


def _largest_divisor(n, cap):
    """Largest divisor of n that is <= cap (small ints, trace time)."""
    best = 1
    for d in range(1, n + 1):
        if n % d == 0 and d <= cap:
            best = d
    return best


@functools.lru_cache(maxsize=None)
def _hw_budgets():
    """VMEM / tile budgets keyed off physical VMEM (proxy for chip generation)."""
    try:
        cap = int(pltpu.get_tpu_info().vmem_capacity_bytes)
    except Exception:
        cap = 64 * 1024 * 1024  # unknown -> assume the smallest (v7x-like)
    if cap >= 96 * 1024 * 1024:
        # v5e / v6e: 128 MiB physical, lowest HBM BW -> go big on tiles.
        return dict(vmem_limit=80 * 1024 * 1024,
                    w_tile_bytes=12 * 1024 * 1024,
                    tm_cap=512,
                    two_cores=False)
    # v7x (64 MiB physical, 2 TCs) or unknown: keep footprint modest, split
    # degenerate grids so both TensorCores get work.
    return dict(vmem_limit=40 * 1024 * 1024,
                w_tile_bytes=6 * 1024 * 1024,
                tm_cap=512,
                two_cores=True)


def fused_matmul(x, w_padded, scale_padded, bias_padded, n_out, relu,
                 out_dtype=jnp.bfloat16):
    """relu_opt((x @ w) * col_scale + bias).

    x:            (M, K) activations (any float; cast to bf16 here).
    w_padded:     (Kp, Np) bf16 or int8 (+/-1), already 128-padded at init.
    scale_padded: (1, Np) f32 per-output-column scale (alpha * bn_scale, or 1).
    bias_padded:  (1, Np) f32 fused bias.
    n_out:        true output width (result sliced to (M, n_out)).
    """
    M, K = x.shape
    Kp, Np = w_padded.shape
    assert K <= Kp
    budgets = _hw_budgets()

    # M tile: multiple of 16 (bf16 packs 2 rows / sublane), capped.
    tm = min(_round_up(M, 16), budgets['tm_cap'])
    Mp = _round_up(M, tm)

    # N tile: lane-dense, up to 1024 wide, exact divisor of padded N.
    tn = 128 * _largest_divisor(Np // 128, 8)
    # v7x megacore: if the (M, N) grid collapsed to (1, 1), split N so both
    # TensorCores get a block (harmless on single-TC chips).
    if (budgets['two_cores'] and Mp // tm == 1 and Np // tn == 1
            and Np >= 256 and (Np // 2) % 128 == 0):
        tn = Np // 2

    # K tile: as deep as the weight-tile budget allows (single-buffered bytes);
    # double buffering + the in-kernel bf16 copy stay within vmem_limit.
    w_bytes = w_padded.dtype.itemsize
    tk_cap = max(1, budgets['w_tile_bytes'] // (w_bytes * tn) // 128)
    tk = 128 * _largest_divisor(Kp // 128, tk_cap)

    xp = x.astype(jnp.bfloat16)
    if (Mp, Kp) != (M, K):
        xp = jnp.pad(xp, ((0, Mp - M), (0, Kp - K)))

    n_k = Kp // tk
    cp = pltpu.CompilerParams(
        dimension_semantics=(("parallel", "parallel") if n_k == 1 else
                             ("parallel", "parallel", "arbitrary")),
        vmem_limit_bytes=budgets['vmem_limit'])

    if n_k == 1:
        out = pl.pallas_call(
            functools.partial(_mm_single_k_kernel, relu=relu),
            out_shape=jax.ShapeDtypeStruct((Mp, Np), out_dtype),
            grid=(Mp // tm, Np // tn),
            in_specs=[
                pl.BlockSpec((tm, tk), lambda i, j: (i, 0)),
                pl.BlockSpec((tk, tn), lambda i, j: (0, j)),
                pl.BlockSpec((1, tn), lambda i, j: (0, j)),
                pl.BlockSpec((1, tn), lambda i, j: (0, j)),
            ],
            out_specs=pl.BlockSpec((tm, tn), lambda i, j: (i, j)),
            compiler_params=cp,
        )(xp, w_padded, scale_padded, bias_padded)
    else:
        out = pl.pallas_call(
            functools.partial(_mm_multi_k_kernel, relu=relu),
            out_shape=jax.ShapeDtypeStruct((Mp, Np), out_dtype),
            grid=(Mp // tm, Np // tn, n_k),
            in_specs=[
                pl.BlockSpec((tm, tk), lambda i, j, k: (i, k)),
                pl.BlockSpec((tk, tn), lambda i, j, k: (k, j)),
                pl.BlockSpec((1, tn), lambda i, j, k: (0, j)),
                pl.BlockSpec((1, tn), lambda i, j, k: (0, j)),
            ],
            out_specs=pl.BlockSpec((tm, tn), lambda i, j, k: (i, j)),
            scratch_shapes=[pltpu.VMEM((tm, tn), jnp.float32)],
            compiler_params=cp,
        )(xp, w_padded, scale_padded, bias_padded)

    if (Mp, Np) != (M, n_out):
        out = out[:M, :n_out]
    return out


# ----------------------------------------------------------------------------
# Layers built on top of the Pallas matmul kernel
# ----------------------------------------------------------------------------
def conv3x3_bn_relu(x, layer):
    """3x3 conv (pad=1, stride=1) + eval-BatchNorm + ReLU, NHWC, bf16 in/out."""
    N, H, W, C = x.shape
    xp = jnp.pad(x, ((0, 0), (1, 1), (1, 1), (0, 0)))
    # im2col: tap-major, channel-minor -> matches (3,3,Cin,Cout) weight reshape
    patches = jnp.concatenate(
        [xp[:, i:i + H, j:j + W, :] for i in range(3) for j in range(3)], axis=-1)
    cols = patches.reshape(N * H * W, 9 * C)
    out = fused_matmul(cols, layer['w'], layer['scale'], layer['bias'],
                       layer['n_out'], relu=True, out_dtype=jnp.bfloat16)
    return out.reshape(N, H, W, layer['n_out'])


def maxpool2(x):
    N, H, W, C = x.shape
    return x.reshape(N, H // 2, 2, W // 2, 2, C).max(axis=(2, 4))


def adaptive_avg_pool(x, out_hw=7):
    """torch.nn.AdaptiveAvgPool2d semantics, NHWC."""
    N, H, W, C = x.shape
    rows = []
    for i in range(out_hw):
        hs, he = (i * H) // out_hw, -(-((i + 1) * H) // out_hw)
        cols = []
        for j in range(out_hw):
            ws, we = (j * W) // out_hw, -(-((j + 1) * W) // out_hw)
            cols.append(x[:, hs:he, ws:we, :].mean(axis=(1, 2)))
        rows.append(jnp.stack(cols, axis=1))
    return jnp.stack(rows, axis=1)  # (N, out_hw, out_hw, C)


# ----------------------------------------------------------------------------
# Parameter construction (deterministic; matches the module's __init__)
# ----------------------------------------------------------------------------
CFG = [[3, 64], [64, 64], ['M'], [64, 128], [128, 128], ['M'],
       [128, 256], [256, 256], [256, 256], ['M'],
       [256, 512], [512, 512], [512, 512], ['M'],
       [512, 512], [512, 512], [512, 512], ['M']]


def _pad2(a, rows, cols):
    r, c = a.shape
    if (rows, cols) != (r, c):
        a = jnp.pad(a, ((0, rows - r), (0, cols - c)))
    return a


def _pad_row(v, cols):
    n = v.shape[0]
    if n != cols:
        v = jnp.pad(v, (0, cols - n))
    return v.reshape(1, cols).astype(jnp.float32)


def init_params(key, num_classes):
    feats, cls = [], []
    eps = 1e-5
    for v in CFG:
        if v == ['M']:
            feats.append(('M', None))
            continue
        cin, cout = v
        key, wk = jax.random.split(key)
        fan_out = cout * 9
        std = (2.0 / fan_out) ** 0.5  # kaiming_normal_ fan_out, relu
        w = jax.random.normal(wk, (3, 3, cin, cout), jnp.float32) * std
        b = jnp.zeros((cout,), jnp.float32)
        # eval-mode BatchNorm with fresh stats: gamma=1, beta=0, mean=0, var=1
        gamma = jnp.ones((cout,), jnp.float32)
        beta = jnp.zeros((cout,), jnp.float32)
        mean = jnp.zeros((cout,), jnp.float32)
        var = jnp.ones((cout,), jnp.float32)
        bn_scale = gamma / jnp.sqrt(var + eps)
        eff_bias = (b - mean) * bn_scale + beta

        K, N = 9 * cin, cout
        Kp, Np = _round_up(K, 128), _round_up(N, 128)
        if v == [3, 64]:
            # plain (non-binarized) first conv: bf16 weights, BN scale in epilogue
            wmat = w.reshape(K, N).astype(jnp.bfloat16)
            col_scale = bn_scale
        else:
            # BinConv2d: sign(W) stored as int8, alpha*bn_scale in the epilogue
            alpha = jnp.mean(jnp.abs(w), axis=(0, 1, 2))
            wmat = jnp.sign(w).reshape(K, N).astype(jnp.int8)
            col_scale = alpha * bn_scale
        feats.append(('C', dict(w=_pad2(wmat, Kp, Np),
                                scale=_pad_row(col_scale, Np),
                                bias=_pad_row(eff_bias, Np),
                                n_out=N)))

    # classifier: BinLinear(25088,4096)+ReLU+Drop, BinLinear(4096,4096)+ReLU+Drop,
    #             Linear(4096, num_classes)
    for cin, cout, binary, relu, out_dtype in [
            (512 * 7 * 7, 4096, True, True, jnp.bfloat16),
            (4096, 4096, True, True, jnp.bfloat16),
            (4096, num_classes, False, False, jnp.float32)]:
        key, wk = jax.random.split(key)
        w = jax.random.normal(wk, (cin, cout), jnp.float32) * 0.01  # normal(0, 0.01)
        b = jnp.zeros((cout,), jnp.float32)
        Kp, Np = _round_up(cin, 128), _round_up(cout, 128)
        if binary:
            alpha = jnp.mean(jnp.abs(w), axis=0)  # per output column
            wmat = jnp.sign(w).astype(jnp.int8)
            col_scale = alpha
        else:
            wmat = w.astype(jnp.bfloat16)
            col_scale = jnp.ones((cout,), jnp.float32)
        cls.append(dict(w=_pad2(wmat, Kp, Np),
                        scale=_pad_row(col_scale, Np),
                        bias=_pad_row(b, Np),
                        n_out=cout, relu=relu, out_dtype=out_dtype))
    return {'features': feats, 'classifier': cls}


# ----------------------------------------------------------------------------
# Forward pass
# ----------------------------------------------------------------------------
def xnor_vgg_forward(params, x_nchw):
    x = jnp.transpose(x_nchw, (0, 2, 3, 1)).astype(jnp.bfloat16)  # NCHW -> NHWC
    for kind, layer in params['features']:
        if kind == 'M':
            x = maxpool2(x)
        else:
            x = conv3x3_bn_relu(x, layer)
    x = adaptive_avg_pool(x, 7)
    # torch.flatten(x, 1) on NCHW flattens in (C, H, W) order
    n = x.shape[0]
    x = jnp.transpose(x, (0, 3, 1, 2)).reshape(n, -1)
    for layer in params['classifier']:
        x = fused_matmul(x, layer['w'], layer['scale'], layer['bias'],
                         layer['n_out'], relu=layer['relu'],
                         out_dtype=layer['out_dtype'])
        # Dropout: inference mode -> identity
    return x


if __name__ == "__main__":
    key = jax.random.PRNGKey(0)
    kx, kp = jax.random.split(key)

    num_classes = 16          # constructor arg (default 1000), kept small
    batch, spatial = 2, 32    # 5 maxpools: 32 -> 1, then adaptive pool to 7x7

    x = jax.random.normal(kx, (batch, 3, spatial, spatial), jnp.float32)
    params = init_params(kp, num_classes)

    out = xnor_vgg_forward(params, x)
    out = jax.block_until_ready(out)
    assert out.shape == (batch, num_classes)
    assert bool(jnp.all(jnp.isfinite(out)))
    print("KERNEL_OK")
</pallas_src>

<mosaic_0001>
module attributes {stable_mosaic.version = 11 : i64} {
  func.func @_mm_single_k_kernel(%arg0: i32, %arg1: i32, %arg2: memref<512x128xbf16, #tpu.memory_space<vmem>>, %arg3: memref<128x128xbf16, #tpu.memory_space<vmem>>, %arg4: memref<1x128xf32, #tpu.memory_space<vmem>>, %arg5: memref<1x128xf32, #tpu.memory_space<vmem>>, %arg6: memref<512x128xbf16, #tpu.memory_space<vmem>>) attributes {dimension_semantics = [#tpu.dimension_semantics<parallel>, #tpu.dimension_semantics<parallel>], iteration_bounds = array<i64: 4, 1>, scalar_prefetch = 0 : i64, scratch_operands = 0 : i64, tpu.core_type = #tpu.core_type<tc>, window_params = [{transform_indices = @transform_0, window_bounds = array<i64: 512, 128>}, {transform_indices = @transform_1, window_bounds = array<i64: 128, 128>}, {transform_indices = @transform_2, window_bounds = array<i64: 1, 128>}, {transform_indices = @transform_3, window_bounds = array<i64: 1, 128>}, {transform_indices = @transform_4, window_bounds = array<i64: 512, 128>}]} {
    %c0 = arith.constant 0 : index
    %c0_0 = arith.constant 0 : index
    %0 = vector.load %arg2[%c0, %c0_0] : memref<512x128xbf16, #tpu.memory_space<vmem>>, vector<512x128xbf16>
    %c0_1 = arith.constant 0 : index
    %c0_2 = arith.constant 0 : index
    %1 = vector.load %arg3[%c0_1, %c0_2] : memref<128x128xbf16, #tpu.memory_space<vmem>>, vector<128x128xbf16>
    %cst = arith.constant dense<0.000000e+00> : vector<512x128xf32>
    %2 = tpu.matmul %0, %1, %cst {dimension_numbers = #tpu.dot_dimension_numbers<[1], [0], [0], [1], [0, 0, 1, 1], [], []>} : vector<512x128xbf16>, vector<128x128xbf16>, vector<512x128xf32> -> vector<512x128xf32>
    %c0_3 = arith.constant 0 : index
    %c0_4 = arith.constant 0 : index
    %3 = vector.load %arg4[%c0_3, %c0_4] : memref<1x128xf32, #tpu.memory_space<vmem>>, vector<1x128xf32>
    %4 = vector.broadcast %3 : vector<1x128xf32> to vector<512x128xf32>
    %5 = arith.mulf %2, %4 : vector<512x128xf32>
    %c0_5 = arith.constant 0 : index
    %c0_6 = arith.constant 0 : index
    %6 = vector.load %arg5[%c0_5, %c0_6] : memref<1x128xf32, #tpu.memory_space<vmem>>, vector<1x128xf32>
    %7 = vector.broadcast %6 : vector<1x128xf32> to vector<512x128xf32>
    %8 = arith.addf %5, %7 : vector<512x128xf32>
    %cst_7 = arith.constant 0.000000e+00 : f32
    %9 = vector.broadcast %cst_7 : f32 to vector<512x128xf32>
    %10 = arith.maximumf %8, %9 : vector<512x128xf32>
    %11 = arith.truncf %10 : vector<512x128xf32> to vector<512x128xbf16>
    %c0_8 = arith.constant 0 : index
    %c0_9 = arith.constant 0 : index
    %12 = vector.load %arg6[%c0_8, %c0_9] : memref<512x128xbf16, #tpu.memory_space<vmem>>, vector<512x128xbf16>
    tpu.vector_store %arg6[%c0_8, %c0_9], %11 {strides = array<i32>} : memref<512x128xbf16, #tpu.memory_space<vmem>>, vector<512x128xbf16>,
    return
  }
  func.func @transform_0(%arg0: i32, %arg1: i32) -> (i32, i32) {
    %c0_i32 = arith.constant 0 : i32
    %c0_i32_0 = arith.constant 0 : i32
    return %arg0, %c0_i32 : i32, i32
  }
  func.func @transform_1(%arg0: i32, %arg1: i32) -> (i32, i32) {
    %c0_i32 = arith.constant 0 : i32
    %c0_i32_0 = arith.constant 0 : i32
    return %c0_i32, %arg1 : i32, i32
  }
  func.func @transform_2(%arg0: i32, %arg1: i32) -> (i32, i32) {
    %c0_i32 = arith.constant 0 : i32
    %c0_i32_0 = arith.constant 0 : i32
    return %c0_i32, %arg1 : i32, i32
  }
  func.func @transform_3(%arg0: i32, %arg1: i32) -> (i32, i32) {
    %c0_i32 = arith.constant 0 : i32
    %c0_i32_0 = arith.constant 0 : i32
    return %c0_i32, %arg1 : i32, i32
  }
  func.func @transform_4(%arg0: i32, %arg1: i32) -> (i32, i32) {
    %c0_i32 = arith.constant 0 : i32
    return %arg0, %arg1 : i32, i32
  }
}

</mosaic_0001>

<bundles_post_ra>
// kernel: tpu_custom_call.1
= control target key start
LH: loop header
LB: loop body
LE: loop exit
PB: predicated region body
PF: predicated region fallthrough
CT: control target
= control target key end

     0   :  { %s2296_s0 = inlined_call_operand.hbm [shape: bf16[2048,128], index: 0, kind: input, shape index: {}]   ;;  %s2297_s1 = inlined_call_operand.hbm [shape: bf16[128,128], index: 1, kind: input, shape index: {}]   ;;  %s2298_s2 = inlined_call_operand.vmem [shape: f32[1,128], index: 2, kind: input, shape index: {}]   ;;  %s2299_s3 = inlined_call_operand.vmem [shape: f32[1,128], index: 3, kind: input, shape index: {}]   ;;  %s2300_s4 = inlined_call_operand.hbm [shape: bf16[2048,128], index: 4, kind: output, shape index: {}]  }
   0x1   :  { %2304 = sst [smem:[#allocation12_spill]] %s2297_s1 }
   0x2   :  { %9 = vsyncpa [#allocation3], 0 }
   0x3   :  { %11 = vsyncpa [#allocation3 + $0x1], 0 }
   0x4   :  { %12 = vsyncpa [#allocation6], 0 }
   0x5   :  { %13 = vsyncpa [#allocation4], 0 }
   0x6   :  { %15 = vsyncpa [#allocation4 + $0x1], 0  ;;  %s1932_s15 = smov 0   ;;  %s1934_s16 = smov 0  }
   0x7   :  { %s1936_s17 = smov 0   ;;  %s1938_s18 = smov 0  }
   0x8   :  { %s1940_s19 = smov 0   ;;  %s1942_s20 = smov 0  }
   0x9 LB: > { %s1239_s21 = sadd.s32 4294967295, %s1900_s20   ;;  %s1240_s22 = sadd.s32 4294967294, %s1900_s20   ;;  %s1900_s20 = sphi %s1942_s20, %s21_s20   ;;  %s1896_s19 = sphi %s1940_s19, %s2321_s19   ;;  %s1892_s18 = sphi %s1938_s18, %s2320_s18   ;;  %s1888_s17 = sphi %s1936_s17, %s2319_s17   ;;  %s1884_s16 = sphi %s1934_s16, %s2318_s16   ;;  %s1880_s15 = sphi %s1932_s15, %s2317_s15  }
   0xa   : > { %p53_p0 = scmp.ne.s32.totalorder %s1884_s16, %s1880_s15  ;;  %p1966_p1 = scmp.eq.s32.totalorder %s1239_s21, 0 }
   0xb   : > { %p1970_p2 = scmp.eq.s32.totalorder %s1239_s21, 3  ;;  %p163_p3 = scmp.eq.s32.totalorder %s1240_s22, 3 }
   0xc   : > { %p1976_p4 = por %p1966_p1, %p53_p0  ;;  %p1241_p5 = scmp.ge.s32.totalorder %s1900_s20, 1 }
   0xd   : > { %p1981_p6 = por %p163_p3, %p53_p0  ;;  %p170_p7 = scmp.lt.s32.totalorder %s1900_s20, 5 }
   0xe   : > { %s2309_s1 = sld [smem:[#allocation12_spill]]  ;;  %s1902_s5 = smov [#allocation5]  }
   0xf   : > { %p1989_p8 = pnand %p1241_p5, %p170_p7  ;;  %s185_s6 = sshll.u32 %s1902_s5, 4  ;;  %s186_s6 = int_to_ptr.vmem [resolvable:$true] %s185_s6 }
  0x10   : > { %s2301_s7 = smov 64   ;;  %s2302_s8 = smov 4  }
  0x11   : > { %p1683_p9 = pneg %p1989_p8  ;;  %s33_s9 = sadd.s32 1, %s1896_s19 }
  0x12   : > { %p35_p11 = scmp.ge.s32.totalorder %s33_s9, 4  ;;  %s40_s10 = sadd.s32 1, %s1888_s17 }
  0x13   : > { %p1684_p10 = pnand %p1683_p9, %p1966_p1  ;;  %p47_p12 = scmp.ne.s32.totalorder %s1888_s17, %s1884_s16 }
  0x14   : > { %s183_s29 = sshll.u32 %s2309_s1, 4  ;;  %p48_p13 = scmp.eq.s32.totalorder %s1900_s20, 0  ;;  %s184_s29 = int_to_ptr.hbm [resolvable:$true] %s183_s29 }
  0x15   : > { %1686 = dma.hbm_to_vmem [thread:$0]  (!%p1684_p10), %s184_s29, 1024, %s186_s6, [#allocation6], %s2301_s7, %s2301_s7, %s2302_s8  }
  0x16   : > { %s2323_s9 = smov (%p35_p11, %s33_s9), 0  ;;  %p2007_p0 = por %p48_p13, %p47_p12 }
  0x17   : > { %2311 = sst [smem:[#allocation11_spill]] %s2323_s9  ;;  %p2013_p3 = por %p1970_p2, %p47_p12 }
  0x18   : > { %s37_s13 = ssub.s32 %s1896_s19, %s2323_s9  ;;  %p1696_p5 = scmp.lt.s32.totalorder %s1900_s20, 4 }
  0x19   : > { %p38_p7 = scmp.eq.s32.totalorder %s37_s13, 0  ;;  %s211_s14 = sand.u32 1, %s1888_s17  }
  0x1a   : > { %s1246_s21 = sshll.u32 %s211_s14, 8  ;;  %s1418_s27 = sshll.u32 %s1896_s19, 8 }
  0x1b   : > { %s2022_s22 = scalar_select %p38_p7, %s1888_s17, %s40_s10  }
  0x1c   : > { %s220_s5 = scalar_lea.hbm %s2296_s0, %s1418_s27  ;;  %s215_s6 = scalar_lea.vmem [#allocation2], %s1246_s21 }
  0x1d   : > { %s223_s7 = sshll.u32 %s215_s6, 4  ;;  %s221_s24 = sshll.u32 %s220_s5, 4  ;;  %s224_s7 = int_to_ptr.vmem [resolvable:$true] %s223_s7  ;;  %s222_s24 = int_to_ptr.hbm [resolvable:$true] %s221_s24 }
  0x1e   : > { %p1688_p2 = pnand %p1696_p5, %p2007_p0  ;;  %s212_s8 = scalar_lea.sflag [#allocation3], %s211_s14 }
  0x1f   : > { %s2314_s1 = smov 4   ;;  %s2315_s9 = smov 64  }
  0x20   : > { %1690 = dma.hbm_to_vmem [thread:$0]  (!%p1688_p2), %s222_s24, 4096, %s224_s7, %s212_s8, %s2315_s9, %s2315_s9, %s2314_s1  }
  0x21   : > { %235 = sbr.rel (%p1989_p8) target bundleno = 339 (0x153), region = 36  ;;  %s2036_s10 = sand.u32 (!%p1989_p8), 1, %s1884_s16  }
  0x22   : > { %s1250_s13 = sshll.u32 (!%p1989_p8), %s2036_s10, 8  ;;  %s238_s21 = scalar_lea.sflag (!%p1989_p8), [#allocation3], %s2036_s10 }
  0x23   : > { %s2042_s11 = scalar_lea.vmem (!%p1989_p8), [#allocation2], %s1250_s13 }
  0x26   : > { %1867 = dma.done.wait (%p1976_p4), %s238_s21, 4096  }
  0x27   : > { %1869 = vsyncadd (%p1976_p4), %s238_s21, 4294963200 }
  0x28   : > { %1871 = dma.done.wait (%p1966_p1), [#allocation6], 1024  }
  0x29   : > { %1873 = vsyncadd (%p1966_p1), [#allocation6], 4294966272  ;;  %v1458_v0 = vld [vmem:[#allocation5 + $0x38] sm:$0xff]  ;;  %v1457_v1 = vld [vmem:[#allocation5 + $0x30] sm:$0xff]  ;;  %s2110_s7 = scalar_lea.vmem [#allocation7], %s1250_s13  ;;  %s1459_s8 = sshll.u32 %s1892_s18, 8 }
  0x2a   : > { %606 = vmatpush.bf16.msra.mxu0 %v1458_v0  ;;  %1651 = vmatpush.bf16.msra.mxu1 %v1458_v0  ;;  %v1456_v2 = vld [vmem:[#allocation5 + $0x28] sm:$0xff]  ;;  %v1455_v3 = vld [vmem:[#allocation5 + $0x20] sm:$0xff]  ;;  %v1454_v4 = vld [vmem:[#allocation5 + $0x18] sm:$0xff]  ;;  %s1116_s27 = scalar_lea.hbm %s2300_s4, %s1459_s8  ;;  %s1117_s18 = sshll.u32 %s2110_s7, 4  ;;  %s1118_s18 = int_to_ptr.vmem [resolvable:$true] %s1117_s18 }
  0x2b   : > { %1652 = vmatpush.bf16.msra.mxu2 %v1458_v0  ;;  %1653 = vmatpush.bf16.msra.mxu3 %v1458_v0  ;;  %v1453_v5 = vld [vmem:[#allocation5 + $0x10] sm:$0xff]  ;;  %v1452_v6 = vld [vmem:[#allocation5 + $0x8] sm:$0xff]  ;;  %v1451_v7 = vld [vmem:[#allocation5] sm:$0xff]  ;;  %s1119_s28 = sshll.u32 %s1116_s27, 4  ;;  %s1104_s29 = scalar_lea.sflag [#allocation4], %s2036_s10  ;;  %s1120_s28 = int_to_ptr.hbm [resolvable:$true] %s1119_s28 }
  0x2c   : > { %v1419_v8 = vld [vmem:[%s2042_s11] sm:$0xff]  ;;  %v1420_v12 = vld [vmem:[%s2042_s11 + $0x8] sm:$0xff]  ;;  %v1421_v16 = vld [vmem:[%s2042_s11 + $0x10] sm:$0xff]  ;;  %s1828_s5 = sshra.s32 %s1120_s28, 4  ;;  %s1834_s21 = scalar_lea.hbm %s2300_s4, 1024  ;;  %s1829_s5 = int_to_ptr.hbm [resolvable:$true] %s1828_s5 }
  0x2d   : > { %v1427_v9 = vld [vmem:[%s2042_s11 + $0x40] sm:$0xff]  ;;  %v1428_v13 = vld [vmem:[%s2042_s11 + $0x48] sm:$0xff]  ;;  %v1429_v17 = vld [vmem:[%s2042_s11 + $0x50] sm:$0xff]  ;;  %s1830_s6 = scalar_lea.hbm %s1829_s5, 256  ;;  %p1835_p9 = scmp.lt.s32.totalorder %s1829_s5, %s2300_s4 }
  0x2e   : > { %607 = vmatpush.bf16.msra.mxu0 %v1457_v1  ;;  %1654 = vmatpush.bf16.msra.mxu1 %v1457_v1  ;;  %v1435_v10 = vld [vmem:[%s2042_s11 + $0x80] sm:$0xff]  ;;  %v1436_v14 = vld [vmem:[%s2042_s11 + $0x88] sm:$0xff]  ;;  %v1437_v18 = vld [vmem:[%s2042_s11 + $0x90] sm:$0xff]  ;;  %p1831_p1 = scmp.ne.s32.totalorder %s1829_s5, %s1830_s6  ;;  %p1836_p10 = scmp.lt.s32.totalorder %s1834_s21, %s1830_s6 }
  0x2f   : > { %1655 = vmatpush.bf16.msra.mxu2 %v1457_v1  ;;  %1656 = vmatpush.bf16.msra.mxu3 %v1457_v1  ;;  %v1443_v11 = vld [vmem:[%s2042_s11 + $0xc0] sm:$0xff]  ;;  %v1444_v15 = vld [vmem:[%s2042_s11 + $0xc8] sm:$0xff]  ;;  %v1445_v19 = vld [vmem:[%s2042_s11 + $0xd0] sm:$0xff] }
  0x30   : > { %v1422_v20 = vld [vmem:[%s2042_s11 + $0x18] sm:$0xff]  ;;  %v1423_v24 = vld [vmem:[%s2042_s11 + $0x20] sm:$0xff]  ;;  %v1424_v28 = vld [vmem:[%s2042_s11 + $0x28] sm:$0xff]  ;;  %p1832_p4 = pnand %p1831_p1, %p2013_p3  ;;  %p1837_p11 = por %p1836_p10, %p1835_p9 }
  0x31   : > { %v1430_v21 = vld [vmem:[%s2042_s11 + $0x58] sm:$0xff]  ;;  %v1431_v25 = vld [vmem:[%s2042_s11 + $0x60] sm:$0xff]  ;;  %v1432_v29 = vld [vmem:[%s2042_s11 + $0x68] sm:$0xff] }
  0x32   : > { %608 = vmatpush.bf16.msra.mxu0 %v1456_v2  ;;  %1657 = vmatpush.bf16.msra.mxu1 %v1456_v2  ;;  %v1438_v22 = vld [vmem:[%s2042_s11 + $0x98] sm:$0xff]  ;;  %v1439_v26 = vld [vmem:[%s2042_s11 + $0xa0] sm:$0xff]  ;;  %v1440_v30 = vld [vmem:[%s2042_s11 + $0xa8] sm:$0xff]  ;;  %p1833_p8 = pneg %p1832_p4 }
  0x33   : > { %1658 = vmatpush.bf16.msra.mxu2 %v1456_v2  ;;  %1659 = vmatpush.bf16.msra.mxu3 %v1456_v2  ;;  %v1446_v23 = vld [vmem:[%s2042_s11 + $0xd8] sm:$0xff]  ;;  %v1447_v27 = vld [vmem:[%s2042_s11 + $0xe0] sm:$0xff]  ;;  %v1448_v31 = vld [vmem:[%s2042_s11 + $0xe8] sm:$0xff] }
  0x34   : > { %v1425_v32 = vld [vmem:[%s2042_s11 + $0x30] sm:$0xff]  ;;  %v1426_v36 = vld [vmem:[%s2042_s11 + $0x38] sm:$0xff]  ;;  %v2087_v42 = vld [vmem:[%s2298_s2] ss:$0 sm:$0xff]  ;;  %p1838_p12 = pnand %p1837_p11, %p1833_p8 }
  0x35   : > { %v1433_v33 = vld [vmem:[%s2042_s11 + $0x70] sm:$0xff]  ;;  %v1434_v37 = vld [vmem:[%s2042_s11 + $0x78] sm:$0xff]  ;;  %v2093_v44 = vld [vmem:[%s2299_s3] ss:$0 sm:$0xff] }
  0x36   : > { %609 = vmatpush.bf16.msra.mxu0 %v1455_v3  ;;  %1660 = vmatpush.bf16.msra.mxu1 %v1455_v3  ;;  %v1441_v34 = vld [vmem:[%s2042_s11 + $0xb0] sm:$0xff]  ;;  %v1442_v38 = vld [vmem:[%s2042_s11 + $0xb8] sm:$0xff] }
  0x37   : > { %1661 = vmatpush.bf16.msra.mxu2 %v1455_v3  ;;  %1662 = vmatpush.bf16.msra.mxu3 %v1455_v3  ;;  %v1449_v35 = vld [vmem:[%s2042_s11 + $0xf0] sm:$0xff]  ;;  %v1450_v39 = vld [vmem:[%s2042_s11 + $0xf8] sm:$0xff] }
  0x3a   : > { %610 = vmatpush.bf16.msra.mxu0 %v1454_v4  ;;  %1663 = vmatpush.bf16.msra.mxu1 %v1454_v4 }
  0x3b   : > { %1664 = vmatpush.bf16.msra.mxu2 %v1454_v4  ;;  %1665 = vmatpush.bf16.msra.mxu3 %v1454_v4 }
  0x3e   : > { %611 = vmatpush.bf16.msra.mxu0 %v1453_v5  ;;  %1666 = vmatpush.bf16.msra.mxu1 %v1453_v5 }
  0x3f   : > { %1667 = vmatpush.bf16.msra.mxu2 %v1453_v5  ;;  %1668 = vmatpush.bf16.msra.mxu3 %v1453_v5 }
  0x42   : > { %612 = vmatpush.bf16.msra.mxu0 %v1452_v6  ;;  %1669 = vmatpush.bf16.msra.mxu1 %v1452_v6 }
  0x43   : > { %1670 = vmatpush.bf16.msra.mxu2 %v1452_v6  ;;  %1671 = vmatpush.bf16.msra.mxu3 %v1452_v6 }
  0x46   : > { %613 = vmatpush.bf16.msra.mxu0 %v1451_v7  ;;  %1672 = vmatpush.bf16.msra.mxu1 %v1451_v7 }
  0x47   : > { %1673 = vmatpush.bf16.msra.mxu2 %v1451_v7  ;;  %1674 = vmatpush.bf16.msra.mxu3 %v1451_v7 }
  0x49   : > { %614 = vmatmul.bf16.vlgmr.msra.gmra.mxu0 %v1419_v8  ;;  %654 = vmatmul.bf16.vlgmr.msra.gmra.mxu1 %v1427_v9 }
  0x4a   : > { %694 = vmatmul.bf16.vlgmr.msra.gmra.mxu2 %v1435_v10  ;;  %734 = vmatmul.bf16.vlgmr.msra.gmra.mxu3 %v1443_v11 }
  0x59   : > { %619 = vmatmul.bf16.gmra.mxu0 %v1420_v12  ;;  %659 = vmatmul.bf16.gmra.mxu1 %v1428_v13 }
  0x5a   : > { %699 = vmatmul.bf16.gmra.mxu2 %v1436_v14  ;;  %739 = vmatmul.bf16.gmra.mxu3 %v1444_v15 }
  0x69   : > { %624 = vmatmul.bf16.gmra.mxu0 %v1421_v16  ;;  %664 = vmatmul.bf16.gmra.mxu1 %v1429_v17 }
  0x6a   : > { %704 = vmatmul.bf16.gmra.mxu2 %v1437_v18  ;;  %744 = vmatmul.bf16.gmra.mxu3 %v1445_v19 }
  0x79   : > { %629 = vmatmul.bf16.gmra.mxu0 %v1422_v20  ;;  %669 = vmatmul.bf16.gmra.mxu1 %v1430_v21 }
  0x7a   : > { %709 = vmatmul.bf16.gmra.mxu2 %v1438_v22  ;;  %749 = vmatmul.bf16.gmra.mxu3 %v1446_v23 }
  0x89   : > { %634 = vmatmul.bf16.gmra.mxu0 %v1423_v24  ;;  %674 = vmatmul.bf16.gmra.mxu1 %v1431_v25 }
  0x8a   : > { %714 = vmatmul.bf16.gmra.mxu2 %v1439_v26  ;;  %754 = vmatmul.bf16.gmra.mxu3 %v1447_v27 }
  0x99   : > { %639 = vmatmul.bf16.gmra.mxu0 %v1424_v28  ;;  %679 = vmatmul.bf16.gmra.mxu1 %v1432_v29 }
  0x9a   : > { %719 = vmatmul.bf16.gmra.mxu2 %v1440_v30  ;;  %759 = vmatmul.bf16.gmra.mxu3 %v1448_v31 }
  0xa9   : > { %644 = vmatmul.bf16.gmra.mxu0 %v1425_v32  ;;  %684 = vmatmul.bf16.gmra.mxu1 %v1433_v33 }
  0xaa   : > { %724 = vmatmul.bf16.gmra.mxu2 %v1441_v34  ;;  %764 = vmatmul.bf16.gmra.mxu3 %v1449_v35 }
  0xb9   : > { %649 = vmatmul.bf16.gmra.mxu0 %v1426_v36  ;;  %689 = vmatmul.bf16.gmra.mxu1 %v1434_v37 }
  0xba   : > { %729 = vmatmul.bf16.gmra.mxu2 %v1442_v38  ;;  %769 = vmatmul.bf16.gmra.mxu3 %v1450_v39 }
  0xc6   : > { %v615_v40 = vpop.f32.mrf.mxu0  ;;  %v655_v41 = vpop.f32.mrf.mxu1 }
  0xc7   : > { %v779_v43 = vmul.f32 %v2087_v42, %v615_v40  ;;  %v795_v45 = vmul.f32 %v2087_v42, %v655_v41 }
  0xc9   : > { %v847_v50 = vadd.f32 %v2093_v44, %v779_v43  ;;  %v863_v51 = vadd.f32 %v2093_v44, %v795_v45 }
  0xcb   : > { %v911_v58 = vmax.f32 %v847_v50, 0.0  ;;  %v927_v59 = vmax.f32 %v863_v51, 0.0 }
  0xcd   : > { %v695_v46 = vpop.f32.mrf.mxu2  ;;  %v735_v47 = vpop.f32.mrf.mxu3 }
  0xce   : > { %v617_v48 = vpop.f32.mrf.mxu0  ;;  %v657_v49 = vpop.f32.mrf.mxu1  ;;  %v811_v56 = vmul.f32 %v2087_v42, %v695_v46  ;;  %v827_v57 = vmul.f32 %v2087_v42, %v735_v47 }
  0xcf   : > { %v780_v52 = vmul.f32 %v2087_v42, %v617_v48  ;;  %v796_v53 = vmul.f32 %v2087_v42, %v657_v49 }
  0xd0   : > { %v879_v2 = vadd.f32 %v2093_v44, %v811_v56  ;;  %v895_v3 = vadd.f32 %v2093_v44, %v827_v57 }
  0xd1   : > { %v848_v54 = vadd.f32 %v2093_v44, %v780_v52  ;;  %v864_v55 = vadd.f32 %v2093_v44, %v796_v53 }
  0xd2   : > { %v943_v10 = vmax.f32 %v879_v2, 0.0  ;;  %v959_v11 = vmax.f32 %v895_v3, 0.0 }
  0xd3   : > { %v912_v60 = vmax.f32 %v848_v54, 0.0  ;;  %v928_v61 = vmax.f32 %v864_v55, 0.0 }
  0xd5   : > { %v1463_v62 = vpack.c.bf16 %v912_v60, %v911_v58  ;;  %v1503_v63 = vpack.c.bf16 %v928_v61, %v927_v59  ;;  %v697_v0 = vpop.f32.mrf.mxu2  ;;  %v737_v1 = vpop.f32.mrf.mxu3 }
  0xd6   : > { %v812_v4 = vmul.f32 %v2087_v42, %v697_v0  ;;  %v828_v5 = vmul.f32 %v2087_v42, %v737_v1  ;;  %v620_v6 = vpop.f32.mrf.mxu0  ;;  %v660_v7 = vpop.f32.mrf.mxu1 }
  0xd7   : > { %1464 = vst [vmem:[%s2110_s7] sm:$0xff] %v1463_v62   ;;  %v781_v14 = vmul.f32 %v2087_v42, %v620_v6  ;;  %v797_v15 = vmul.f32 %v2087_v42, %v660_v7 }
  0xd8   : > { %1627 = vst [vmem:[%s2110_s7 + $0x40] sm:$0xff] %v1503_v63   ;;  %v880_v8 = vadd.f32 %v2093_v44, %v812_v4  ;;  %v896_v9 = vadd.f32 %v2093_v44, %v828_v5 }
  0xd9   : > { %v849_v22 = vadd.f32 %v2093_v44, %v781_v14  ;;  %v865_v23 = vadd.f32 %v2093_v44, %v797_v15 }
  0xda   : > { %v944_v12 = vmax.f32 %v880_v8, 0.0  ;;  %v960_v13 = vmax.f32 %v896_v9, 0.0 }
  0xdb   : > { %v913_v30 = vmax.f32 %v849_v22, 0.0  ;;  %v929_v31 = vmax.f32 %v865_v23, 0.0 }
  0xdc   : > { %v1543_v16 = vpack.c.bf16 %v944_v12, %v943_v10  ;;  %v1583_v17 = vpack.c.bf16 %v960_v13, %v959_v11 }
  0xdd   : > { %v700_v18 = vpop.f32.mrf.mxu2  ;;  %v740_v19 = vpop.f32.mrf.mxu3 }
  0xde   : > { %1635 = vst [vmem:[%s2110_s7 + $0x80] sm:$0xff] %v1543_v16   ;;  %v622_v20 = vpop.f32.mrf.mxu0  ;;  %v662_v21 = vpop.f32.mrf.mxu1  ;;  %v813_v28 = vmul.f32 %v2087_v42, %v700_v18  ;;  %v829_v29 = vmul.f32 %v2087_v42, %v740_v19 }
  0xdf   : > { %1643 = vst [vmem:[%s2110_s7 + $0xc0] sm:$0xff] %v1583_v17   ;;  %v782_v24 = vmul.f32 %v2087_v42, %v622_v20  ;;  %v798_v25 = vmul.f32 %v2087_v42, %v662_v21 }
  0xe0   : > { %v881_v38 = vadd.f32 %v2093_v44, %v813_v28  ;;  %v897_v39 = vadd.f32 %v2093_v44, %v829_v29 }
  0xe1   : > { %v850_v26 = vadd.f32 %v2093_v44, %v782_v24  ;;  %v866_v27 = vadd.f32 %v2093_v44, %v798_v25 }
  0xe2   : > { %v945_v48 = vmax.f32 %v881_v38, 0.0  ;;  %v961_v49 = vmax.f32 %v897_v39, 0.0 }
  0xe3   : > { %v914_v32 = vmax.f32 %v850_v26, 0.0  ;;  %v930_v33 = vmax.f32 %v866_v27, 0.0 }
  0xe5   : > { %v1468_v34 = vpack.c.bf16 %v914_v32, %v913_v30  ;;  %v1508_v35 = vpack.c.bf16 %v930_v33, %v929_v31  ;;  %v702_v36 = vpop.f32.mrf.mxu2  ;;  %v742_v37 = vpop.f32.mrf.mxu3 }
  0xe6   : > { %v814_v40 = vmul.f32 %v2087_v42, %v702_v36  ;;  %v830_v41 = vmul.f32 %v2087_v42, %v742_v37  ;;  %v625_v43 = vpop.f32.mrf.mxu0  ;;  %v665_v45 = vpop.f32.mrf.mxu1 }
  0xe7   : > { %1620 = vst [vmem:[%s2110_s7 + $0x8] sm:$0xff] %v1468_v34   ;;  %v783_v52 = vmul.f32 %v2087_v42, %v625_v43  ;;  %v799_v53 = vmul.f32 %v2087_v42, %v665_v45 }
  0xe8   : > { %1628 = vst [vmem:[%s2110_s7 + $0x48] sm:$0xff] %v1508_v35   ;;  %v882_v46 = vadd.f32 %v2093_v44, %v814_v40  ;;  %v898_v47 = vadd.f32 %v2093_v44, %v830_v41 }
  0xe9   : > { %v851_v60 = vadd.f32 %v2093_v44, %v783_v52  ;;  %v867_v61 = vadd.f32 %v2093_v44, %v799_v53 }
  0xea   : > { %v946_v50 = vmax.f32 %v882_v46, 0.0  ;;  %v962_v51 = vmax.f32 %v898_v47, 0.0 }
  0xeb   : > { %v915_v4 = vmax.f32 %v851_v60, 0.0  ;;  %v931_v5 = vmax.f32 %v867_v61, 0.0 }
  0xec   : > { %v1548_v54 = vpack.c.bf16 %v946_v50, %v945_v48  ;;  %v1588_v55 = vpack.c.bf16 %v962_v51, %v961_v49 }
  0xed   : > { %v705_v56 = vpop.f32.mrf.mxu2  ;;  %v745_v57 = vpop.f32.mrf.mxu3 }
  0xee   : > { %1636 = vst [vmem:[%s2110_s7 + $0x88] sm:$0xff] %v1548_v54   ;;  %v627_v58 = vpop.f32.mrf.mxu0  ;;  %v667_v59 = vpop.f32.mrf.mxu1  ;;  %v815_v2 = vmul.f32 %v2087_v42, %v705_v56  ;;  %v831_v3 = vmul.f32 %v2087_v42, %v745_v57 }
  0xef   : > { %1644 = vst [vmem:[%s2110_s7 + $0xc8] sm:$0xff] %v1588_v55   ;;  %v784_v62 = vmul.f32 %v2087_v42, %v627_v58  ;;  %v800_v63 = vmul.f32 %v2087_v42, %v667_v59 }
  0xf0   : > { %v883_v12 = vadd.f32 %v2093_v44, %v815_v2  ;;  %v899_v13 = vadd.f32 %v2093_v44, %v831_v3 }
  0xf1   : > { %v852_v0 = vadd.f32 %v2093_v44, %v784_v62  ;;  %v868_v1 = vadd.f32 %v2093_v44, %v800_v63 }
  0xf2   : > { %v947_v20 = vmax.f32 %v883_v12, 0.0  ;;  %v963_v21 = vmax.f32 %v899_v13, 0.0 }
  0xf3   : > { %v916_v6 = vmax.f32 %v852_v0, 0.0  ;;  %v932_v7 = vmax.f32 %v868_v1, 0.0 }
  0xf5   : > { %v1473_v8 = vpack.c.bf16 %v916_v6, %v915_v4  ;;  %v1513_v9 = vpack.c.bf16 %v932_v7, %v931_v5  ;;  %v707_v10 = vpop.f32.mrf.mxu2  ;;  %v747_v11 = vpop.f32.mrf.mxu3 }
  0xf6   : > { %v816_v14 = vmul.f32 %v2087_v42, %v707_v10  ;;  %v832_v15 = vmul.f32 %v2087_v42, %v747_v11  ;;  %v630_v16 = vpop.f32.mrf.mxu0  ;;  %v670_v17 = vpop.f32.mrf.mxu1 }
  0xf7   : > { %1621 = vst [vmem:[%s2110_s7 + $0x10] sm:$0xff] %v1473_v8   ;;  %v785_v24 = vmul.f32 %v2087_v42, %v630_v16  ;;  %v801_v25 = vmul.f32 %v2087_v42, %v670_v17 }
  0xf8   : > { %1629 = vst [vmem:[%s2110_s7 + $0x50] sm:$0xff] %v1513_v9   ;;  %v884_v18 = vadd.f32 %v2093_v44, %v816_v14  ;;  %v900_v19 = vadd.f32 %v2093_v44, %v832_v15 }
  0xf9   : > { %v853_v32 = vadd.f32 %v2093_v44, %v785_v24  ;;  %v869_v33 = vadd.f32 %v2093_v44, %v801_v25 }
  0xfa   : > { %v948_v22 = vmax.f32 %v884_v18, 0.0  ;;  %v964_v23 = vmax.f32 %v900_v19, 0.0 }
  0xfb   : > { %v917_v40 = vmax.f32 %v853_v32, 0.0  ;;  %v933_v41 = vmax.f32 %v869_v33, 0.0 }
  0xfc   : > { %v1553_v26 = vpack.c.bf16 %v948_v22, %v947_v20  ;;  %v1593_v27 = vpack.c.bf16 %v964_v23, %v963_v21 }
  0xfd   : > { %v710_v28 = vpop.f32.mrf.mxu2  ;;  %v750_v29 = vpop.f32.mrf.mxu3 }
  0xfe   : > { %1637 = vst [vmem:[%s2110_s7 + $0x90] sm:$0xff] %v1553_v26   ;;  %v632_v30 = vpop.f32.mrf.mxu0  ;;  %v672_v31 = vpop.f32.mrf.mxu1  ;;  %v817_v38 = vmul.f32 %v2087_v42, %v710_v28  ;;  %v833_v39 = vmul.f32 %v2087_v42, %v750_v29 }
  0xff   : > { %1645 = vst [vmem:[%s2110_s7 + $0xd0] sm:$0xff] %v1593_v27   ;;  %v786_v34 = vmul.f32 %v2087_v42, %v632_v30  ;;  %v802_v35 = vmul.f32 %v2087_v42, %v672_v31 }
 0x100   : > { %v885_v50 = vadd.f32 %v2093_v44, %v817_v38  ;;  %v901_v51 = vadd.f32 %v2093_v44, %v833_v39 }
 0x101   : > { %v854_v36 = vadd.f32 %v2093_v44, %v786_v34  ;;  %v870_v37 = vadd.f32 %v2093_v44, %v802_v35 }
 0x102   : > { %v949_v58 = vmax.f32 %v885_v50, 0.0  ;;  %v965_v59 = vmax.f32 %v901_v51, 0.0 }
 0x103   : > { %v918_v43 = vmax.f32 %v854_v36, 0.0  ;;  %v934_v45 = vmax.f32 %v870_v37, 0.0 }
 0x105   : > { %v1478_v46 = vpack.c.bf16 %v918_v43, %v917_v40  ;;  %v1518_v47 = vpack.c.bf16 %v934_v45, %v933_v41  ;;  %v712_v48 = vpop.f32.mrf.mxu2  ;;  %v752_v49 = vpop.f32.mrf.mxu3 }
 0x106   : > { %v818_v52 = vmul.f32 %v2087_v42, %v712_v48  ;;  %v834_v53 = vmul.f32 %v2087_v42, %v752_v49  ;;  %v635_v54 = vpop.f32.mrf.mxu0  ;;  %v675_v55 = vpop.f32.mrf.mxu1 }
 0x107   : > { %1622 = vst [vmem:[%s2110_s7 + $0x18] sm:$0xff] %v1478_v46   ;;  %v787_v62 = vmul.f32 %v2087_v42, %v635_v54  ;;  %v803_v63 = vmul.f32 %v2087_v42, %v675_v55 }
 0x108   : > { %1630 = vst [vmem:[%s2110_s7 + $0x58] sm:$0xff] %v1518_v47   ;;  %v886_v56 = vadd.f32 %v2093_v44, %v818_v52  ;;  %v902_v57 = vadd.f32 %v2093_v44, %v834_v53 }
 0x109   : > { %v855_v6 = vadd.f32 %v2093_v44, %v787_v62  ;;  %v871_v7 = vadd.f32 %v2093_v44, %v803_v63 }
 0x10a   : > { %v950_v60 = vmax.f32 %v886_v56, 0.0  ;;  %v966_v61 = vmax.f32 %v902_v57, 0.0 }
 0x10b   : > { %v919_v14 = vmax.f32 %v855_v6, 0.0  ;;  %v935_v15 = vmax.f32 %v871_v7, 0.0 }
 0x10c   : > { %v1558_v0 = vpack.c.bf16 %v950_v60, %v949_v58  ;;  %v1598_v1 = vpack.c.bf16 %v966_v61, %v965_v59 }
 0x10d   : > { %v715_v2 = vpop.f32.mrf.mxu2  ;;  %v755_v3 = vpop.f32.mrf.mxu3 }
 0x10e   : > { %1638 = vst [vmem:[%s2110_s7 + $0x98] sm:$0xff] %v1558_v0   ;;  %v637_v4 = vpop.f32.mrf.mxu0  ;;  %v677_v5 = vpop.f32.mrf.mxu1  ;;  %v819_v12 = vmul.f32 %v2087_v42, %v715_v2  ;;  %v835_v13 = vmul.f32 %v2087_v42, %v755_v3 }
 0x10f   : > { %1646 = vst [vmem:[%s2110_s7 + $0xd8] sm:$0xff] %v1598_v1   ;;  %v788_v8 = vmul.f32 %v2087_v42, %v637_v4  ;;  %v804_v9 = vmul.f32 %v2087_v42, %v677_v5 }
 0x110   : > { %v887_v22 = vadd.f32 %v2093_v44, %v819_v12  ;;  %v903_v23 = vadd.f32 %v2093_v44, %v835_v13 }
 0x111   : > { %v856_v10 = vadd.f32 %v2093_v44, %v788_v8  ;;  %v872_v11 = vadd.f32 %v2093_v44, %v804_v9 }
 0x112   : > { %v951_v30 = vmax.f32 %v887_v22, 0.0  ;;  %v967_v31 = vmax.f32 %v903_v23, 0.0 }
 0x113   : > { %v920_v16 = vmax.f32 %v856_v10, 0.0  ;;  %v936_v17 = vmax.f32 %v872_v11, 0.0 }
 0x115   : > { %v1483_v18 = vpack.c.bf16 %v920_v16, %v919_v14  ;;  %v1523_v19 = vpack.c.bf16 %v936_v17, %v935_v15  ;;  %v717_v20 = vpop.f32.mrf.mxu2  ;;  %v757_v21 = vpop.f32.mrf.mxu3 }
 0x116   : > { %v820_v24 = vmul.f32 %v2087_v42, %v717_v20  ;;  %v836_v25 = vmul.f32 %v2087_v42, %v757_v21  ;;  %v640_v26 = vpop.f32.mrf.mxu0  ;;  %v680_v27 = vpop.f32.mrf.mxu1 }
 0x117   : > { %1623 = vst [vmem:[%s2110_s7 + $0x20] sm:$0xff] %v1483_v18   ;;  %v789_v34 = vmul.f32 %v2087_v42, %v640_v26  ;;  %v805_v35 = vmul.f32 %v2087_v42, %v680_v27 }
 0x118   : > { %1631 = vst [vmem:[%s2110_s7 + $0x60] sm:$0xff] %v1523_v19   ;;  %v888_v28 = vadd.f32 %v2093_v44, %v820_v24  ;;  %v904_v29 = vadd.f32 %v2093_v44, %v836_v25 }
 0x119   : > { %v857_v43 = vadd.f32 %v2093_v44, %v789_v34  ;;  %v873_v45 = vadd.f32 %v2093_v44, %v805_v35 }
 0x11a   : > { %v952_v32 = vmax.f32 %v888_v28, 0.0  ;;  %v968_v33 = vmax.f32 %v904_v29, 0.0 }
 0x11b   : > { %v921_v52 = vmax.f32 %v857_v43, 0.0  ;;  %v937_v53 = vmax.f32 %v873_v45, 0.0 }
 0x11c   : > { %v1563_v36 = vpack.c.bf16 %v952_v32, %v951_v30  ;;  %v1603_v37 = vpack.c.bf16 %v968_v33, %v967_v31 }
 0x11d   : > { %v720_v38 = vpop.f32.mrf.mxu2  ;;  %v760_v39 = vpop.f32.mrf.mxu3 }
 0x11e   : > { %1639 = vst [vmem:[%s2110_s7 + $0xa0] sm:$0xff] %v1563_v36   ;;  %v642_v40 = vpop.f32.mrf.mxu0  ;;  %v682_v41 = vpop.f32.mrf.mxu1  ;;  %v821_v50 = vmul.f32 %v2087_v42, %v720_v38  ;;  %v837_v51 = vmul.f32 %v2087_v42, %v760_v39 }
 0x11f   : > { %1647 = vst [vmem:[%s2110_s7 + $0xe0] sm:$0xff] %v1603_v37   ;;  %v790_v46 = vmul.f32 %v2087_v42, %v642_v40  ;;  %v806_v47 = vmul.f32 %v2087_v42, %v682_v41 }
 0x120   : > { %v889_v60 = vadd.f32 %v2093_v44, %v821_v50  ;;  %v905_v61 = vadd.f32 %v2093_v44, %v837_v51 }
 0x121   : > { %v858_v48 = vadd.f32 %v2093_v44, %v790_v46  ;;  %v874_v49 = vadd.f32 %v2093_v44, %v806_v47 }
 0x122   : > { %v953_v4 = vmax.f32 %v889_v60, 0.0  ;;  %v969_v5 = vmax.f32 %v905_v61, 0.0 }
 0x123   : > { %v922_v54 = vmax.f32 %v858_v48, 0.0  ;;  %v938_v55 = vmax.f32 %v874_v49, 0.0 }
 0x125   : > { %v1488_v56 = vpack.c.bf16 %v922_v54, %v921_v52  ;;  %v1528_v57 = vpack.c.bf16 %v938_v55, %v937_v53  ;;  %v722_v58 = vpop.f32.mrf.mxu2  ;;  %v762_v59 = vpop.f32.mrf.mxu3 }
 0x126   : > { %v822_v62 = vmul.f32 %v2087_v42, %v722_v58  ;;  %v838_v63 = vmul.f32 %v2087_v42, %v762_v59  ;;  %v645_v0 = vpop.f32.mrf.mxu0  ;;  %v685_v1 = vpop.f32.mrf.mxu1 }
 0x127   : > { %1624 = vst [vmem:[%s2110_s7 + $0x28] sm:$0xff] %v1488_v56   ;;  %v791_v8 = vmul.f32 %v2087_v42, %v645_v0  ;;  %v807_v9 = vmul.f32 %v2087_v42, %v685_v1 }
 0x128   : > { %1632 = vst [vmem:[%s2110_s7 + $0x68] sm:$0xff] %v1528_v57   ;;  %v890_v2 = vadd.f32 %v2093_v44, %v822_v62  ;;  %v906_v3 = vadd.f32 %v2093_v44, %v838_v63 }
 0x129   : > { %v859_v16 = vadd.f32 %v2093_v44, %v791_v8  ;;  %v875_v17 = vadd.f32 %v2093_v44, %v807_v9 }
 0x12a   : > { %v954_v6 = vmax.f32 %v890_v2, 0.0  ;;  %v970_v7 = vmax.f32 %v906_v3, 0.0 }
 0x12b   : > { %v923_v24 = vmax.f32 %v859_v16, 0.0  ;;  %v939_v25 = vmax.f32 %v875_v17, 0.0 }
 0x12c   : > { %v1568_v10 = vpack.c.bf16 %v954_v6, %v953_v4  ;;  %v1608_v11 = vpack.c.bf16 %v970_v7, %v969_v5 }
 0x12d   : > { %v725_v12 = vpop.f32.mrf.mxu2  ;;  %v765_v13 = vpop.f32.mrf.mxu3 }
 0x12e   : > { %1640 = vst [vmem:[%s2110_s7 + $0xa8] sm:$0xff] %v1568_v10   ;;  %v647_v14 = vpop.f32.mrf.mxu0  ;;  %v687_v15 = vpop.f32.mrf.mxu1  ;;  %v823_v22 = vmul.f32 %v2087_v42, %v725_v12  ;;  %v839_v23 = vmul.f32 %v2087_v42, %v765_v13 }
 0x12f   : > { %1648 = vst [vmem:[%s2110_s7 + $0xe8] sm:$0xff] %v1608_v11   ;;  %v792_v18 = vmul.f32 %v2087_v42, %v647_v14  ;;  %v808_v19 = vmul.f32 %v2087_v42, %v687_v15 }
 0x130   : > { %v891_v32 = vadd.f32 %v2093_v44, %v823_v22  ;;  %v907_v33 = vadd.f32 %v2093_v44, %v839_v23 }
 0x131   : > { %v860_v20 = vadd.f32 %v2093_v44, %v792_v18  ;;  %v876_v21 = vadd.f32 %v2093_v44, %v808_v19 }
 0x132   : > { %v955_v40 = vmax.f32 %v891_v32, 0.0  ;;  %v971_v41 = vmax.f32 %v907_v33, 0.0 }
 0x133   : > { %v924_v26 = vmax.f32 %v860_v20, 0.0  ;;  %v940_v27 = vmax.f32 %v876_v21, 0.0 }
 0x135   : > { %v1493_v28 = vpack.c.bf16 %v924_v26, %v923_v24  ;;  %v1533_v29 = vpack.c.bf16 %v940_v27, %v939_v25  ;;  %v727_v30 = vpop.f32.mrf.mxu2  ;;  %v767_v31 = vpop.f32.mrf.mxu3 }
 0x136   : > { %v824_v34 = vmul.f32 %v2087_v42, %v727_v30  ;;  %v840_v35 = vmul.f32 %v2087_v42, %v767_v31  ;;  %v650_v36 = vpop.f32.mrf.mxu0  ;;  %v690_v37 = vpop.f32.mrf.mxu1 }
 0x137   : > { %1625 = vst [vmem:[%s2110_s7 + $0x30] sm:$0xff] %v1493_v28   ;;  %v793_v46 = vmul.f32 %v2087_v42, %v650_v36  ;;  %v809_v47 = vmul.f32 %v2087_v42, %v690_v37 }
 0x138   : > { %1633 = vst [vmem:[%s2110_s7 + $0x70] sm:$0xff] %v1533_v29   ;;  %v892_v38 = vadd.f32 %v2093_v44, %v824_v34  ;;  %v908_v39 = vadd.f32 %v2093_v44, %v840_v35 }
 0x139   : > { %v861_v54 = vadd.f32 %v2093_v44, %v793_v46  ;;  %v877_v55 = vadd.f32 %v2093_v44, %v809_v47 }
 0x13a   : > { %v956_v43 = vmax.f32 %v892_v38, 0.0  ;;  %v972_v45 = vmax.f32 %v908_v39, 0.0 }
 0x13b   : > { %v925_v62 = vmax.f32 %v861_v54, 0.0  ;;  %v941_v63 = vmax.f32 %v877_v55, 0.0 }
 0x13c   : > { %v1573_v48 = vpack.c.bf16 %v956_v43, %v955_v40  ;;  %v1613_v49 = vpack.c.bf16 %v972_v45, %v971_v41 }
 0x13d   : > { %v730_v50 = vpop.f32.mrf.mxu2  ;;  %v770_v51 = vpop.f32.mrf.mxu3 }
 0x13e   : > { %1641 = vst [vmem:[%s2110_s7 + $0xb0] sm:$0xff] %v1573_v48   ;;  %v652_v52 = vpop.f32.mrf.mxu0  ;;  %v692_v53 = vpop.f32.mrf.mxu1  ;;  %v825_v60 = vmul.f32 %v2087_v42, %v730_v50  ;;  %v841_v61 = vmul.f32 %v2087_v42, %v770_v51 }
 0x13f   : > { %1649 = vst [vmem:[%s2110_s7 + $0xf0] sm:$0xff] %v1613_v49   ;;  %v794_v56 = vmul.f32 %v2087_v42, %v652_v52  ;;  %v810_v57 = vmul.f32 %v2087_v42, %v692_v53 }
 0x140   : > { %v893_v6 = vadd.f32 %v2093_v44, %v825_v60  ;;  %v909_v7 = vadd.f32 %v2093_v44, %v841_v61 }
 0x141   : > { %v862_v58 = vadd.f32 %v2093_v44, %v794_v56  ;;  %v878_v59 = vadd.f32 %v2093_v44, %v810_v57 }
 0x142   : > { %v957_v12 = vmax.f32 %v893_v6, 0.0  ;;  %v973_v13 = vmax.f32 %v909_v7, 0.0 }
 0x143   : > { %v926_v0 = vmax.f32 %v862_v58, 0.0  ;;  %v942_v1 = vmax.f32 %v878_v59, 0.0 }
 0x145   : > { %v1498_v2 = vpack.c.bf16 %v926_v0, %v925_v62  ;;  %v1538_v3 = vpack.c.bf16 %v942_v1, %v941_v63  ;;  %v732_v4 = vpop.f32.mrf.mxu2  ;;  %v772_v5 = vpop.f32.mrf.mxu3 }
 0x146   : > { %v826_v8 = vmul.f32 %v2087_v42, %v732_v4  ;;  %v842_v9 = vmul.f32 %v2087_v42, %v772_v5 }
 0x147   : > { %1626 = vst [vmem:[%s2110_s7 + $0x38] sm:$0xff] %v1498_v2  }
 0x148   : > { %1634 = vst [vmem:[%s2110_s7 + $0x78] sm:$0xff] %v1538_v3   ;;  %v894_v10 = vadd.f32 %v2093_v44, %v826_v8  ;;  %v910_v11 = vadd.f32 %v2093_v44, %v842_v9 }
 0x14a   : > { %v958_v14 = vmax.f32 %v894_v10, 0.0  ;;  %v974_v42 = vmax.f32 %v910_v11, 0.0 }
 0x14c   : > { %v1578_v15 = vpack.c.bf16 %v958_v14, %v957_v12  ;;  %v1618_v16 = vpack.c.bf16 %v974_v42, %v973_v13 }
 0x14e   : > { %1642 = vst [vmem:[%s2110_s7 + $0xb8] sm:$0xff] %v1578_v15  }
 0x14f   : > { %1650 = vst [vmem:[%s2110_s7 + $0xf8] sm:$0xff] %v1618_v16  }
 0x150   : > { %1841 = shalt.err (!%p1838_p12)
}
 0x151   : > { %s1905_s10 = smov 64   ;;  %s1906_s23 = smov 4  }
 0x152   : > { %1681 = dma.vmem_to_hbm [thread:$0]  (%p2013_p3), %s1118_s18, 4096, %s1120_s28, %s1104_s29, %s1905_s10, %s1905_s10, %s1906_s23  }
 0x153 PF: > { %p1698_p13 = scmp.ge.s32.totalorder %s1900_s20, 2  ;;  %s1134_s25 = sand.u32 1, %s1880_s15  }
 0x154   : > { %s1135_s30 = scalar_lea.sflag [#allocation4], %s1134_s25 }
 0x155   : > { %p1692_p0 = pnand %p1698_p13, %p1981_p6 }
 0x157   : > { %p1693_p5 = pneg %p1692_p0 }
 0x159   : > { %1875 = dma.done.wait (%p1693_p5), %s1135_s30, 4096  }
 0x15a   : > { %1877 = vsyncadd (%p1693_p5), %s1135_s30, 4294963200  ;;  %s21_s20 = sadd.s32 1, %s1900_s20   ;;  %s2316_s12 = sld [smem:[#allocation11_spill]] }
 0x15b   : > { %p18_p7 = scmp.ge.s32.totalorder %s21_s20, 6   ;;  %s2317_s15 = smov %s1884_s16 }
 0x15c   : > { %s2318_s16 = smov %s1888_s17  ;;  %s2319_s17 = smov %s2022_s22 }
 0x15d   : > { %s2320_s18 = smov %s1896_s19  ;;  %20 = sbr.rel (!%p18_p7) target bundleno = 9 (0x9), region = 92 }
 0x160   : > { %s2321_s19 = smov %s2316_s12 }
 0x162   :  { %1141 = vsyncpa [#allocation3], 1 }
 0x163   :  { %1143 = vsyncpa [#allocation3 + $0x1], 1 }
 0x164   :  { %1144 = vsyncpa [#allocation6], 1 }
 0x165   :  { %1145 = vsyncpa [#allocation4], 1 }
 0x166   :  { %1147 = vsyncpa [#allocation4 + $0x1], 1 }

</bundles_post_ra>
